<compile_context>
chip_gen: v5e
topology: v5e:2x2
jax: 0.10.0
libtpu: 0.0.40
codegen_flags: <defaults>
</compile_context>

<pallas_src>
import math
import functools

import jax
import jax.numpy as jnp
from jax import lax
from jax.experimental import pallas as pl
from jax.experimental.pallas import tpu as pltpu

NEG_INF = -1e30  # large finite negative instead of -inf (NaN-safe masking)
VMEM_LIMIT = 40 * 1024 * 1024  # explicit budget, safe on v5e/v6e/v7x


# ---------------------------------------------------------------------------
# Kernel 1: per-head QKV projection (weights VMEM-resident, scale folded in q)
# ---------------------------------------------------------------------------
def _qkv_kernel(x_ref, wq_ref, wk_ref, wv_ref, bq_ref, bk_ref, bv_ref,
                q_ref, k_ref, v_ref, *, scale):
    h = pl.program_id(2)
    x = x_ref[...]                                   # (bq, C) bf16

    q = jnp.dot(x, wq_ref[h], preferred_element_type=jnp.float32)
    q_ref[...] = ((q + bq_ref[h]) * scale).astype(q_ref.dtype)

    k = jnp.dot(x, wk_ref[h], preferred_element_type=jnp.float32)
    k_ref[...] = (k + bk_ref[h]).astype(k_ref.dtype)

    v = jnp.dot(x, wv_ref[h], preferred_element_type=jnp.float32)
    v_ref[...] = (v + bv_ref[h]).astype(v_ref.dtype)


# ---------------------------------------------------------------------------
# Kernel 2: fused flash attention (online softmax, causal) + output projection
# ---------------------------------------------------------------------------
def _flash_proj_kernel(q_ref, k_ref, v_ref, wp_ref, bp_ref, o_ref,
                       m_ref, l_ref, acc_ref, acc_out_ref,
                       *, block_q, block_k):
    qi = pl.program_id(1)
    h = pl.program_id(2)
    ki = pl.program_id(3)
    n_h = pl.num_programs(2)
    n_k = pl.num_programs(3)

    @pl.when(ki == 0)
    def _():
        m_ref[...] = jnp.full_like(m_ref, NEG_INF)
        l_ref[...] = jnp.zeros_like(l_ref)
        acc_ref[...] = jnp.zeros_like(acc_ref)

    @pl.when(jnp.logical_and(h == 0, ki == 0))
    def _():
        acc_out_ref[...] = jnp.zeros_like(acc_out_ref)

    # Only process KV blocks not entirely above the causal diagonal.
    # (Their DMAs are also suppressed by the clamped index_map.)
    @pl.when(ki * block_k < (qi + 1) * block_q)
    def _():
        q = q_ref[...]                               # (bq, D) bf16, pre-scaled
        k = k_ref[...]                               # (bk, D) bf16
        v = v_ref[...]                               # (bk, D) bf16

        # s = q @ k^T without materializing a transpose (contract D with D).
        s = lax.dot_general(q, k, (((1,), (1,)), ((), ())),
                            preferred_element_type=jnp.float32)  # (bq, bk) f32

        def update(s_blk):
            m_prev = m_ref[...]                                   # (bq, 1)
            m_new = jnp.maximum(m_prev, jnp.max(s_blk, axis=-1, keepdims=True))
            alpha = jnp.exp(m_prev - m_new)
            p = jnp.exp(s_blk - m_new)                            # (bq, bk) f32
            l_ref[...] = alpha * l_ref[...] + jnp.sum(p, axis=-1, keepdims=True)
            acc_ref[...] = alpha * acc_ref[...] + jnp.dot(
                p.astype(v.dtype), v, preferred_element_type=jnp.float32)
            m_ref[...] = m_new

        # Mask only on blocks that straddle the diagonal; interior blocks
        # (max col <= min row) skip the iota/compare/where entirely.
        straddles = (ki + 1) * block_k - 1 > qi * block_q

        @pl.when(straddles)
        def _():
            row = qi * block_q + lax.broadcasted_iota(jnp.int32, s.shape, 0)
            col = ki * block_k + lax.broadcasted_iota(jnp.int32, s.shape, 1)
            update(jnp.where(col <= row, s, NEG_INF))

        @pl.when(jnp.logical_not(straddles))
        def _():
            update(s)

    # Per-head epilogue: normalize and fold into the output projection.
    @pl.when(ki == n_k - 1)
    def _():
        inv_l = pl.reciprocal(l_ref[...], approx=True)            # EUP, not VPU
        y_h = (acc_ref[...] * inv_l).astype(q_ref.dtype)          # (bq, D) bf16
        acc_out_ref[...] += jnp.dot(y_h, wp_ref[h],
                                    preferred_element_type=jnp.float32)

        @pl.when(h == n_h - 1)
        def _():
            # Single lane-dense (block_q, C) store.
            o_ref[...] = (acc_out_ref[...] + bp_ref[...]).astype(o_ref.dtype)


# ---------------------------------------------------------------------------
# Wrapper
# ---------------------------------------------------------------------------
def causal_self_attention(x, w_attn, b_attn, w_proj, b_proj, n_head,
                          *, block_q=256, block_k=512,
                          compute_dtype=jnp.bfloat16):
    """x: (B, T, C); w_attn: (C, 3C); b_attn: (3C,); w_proj: (C, C); b_proj: (C,).

    Weights are (in, out), i.e. y = x @ W + b (== PyTorch x @ W.T + b).
    """
    B, T, C = x.shape
    assert C % n_head == 0
    H = n_head
    D = C // H
    block_q = min(block_q, T)
    block_k = min(block_k, T)
    assert T % block_q == 0 and T % block_k == 0
    n_q = T // block_q
    n_k = T // block_k
    scale = 1.0 / math.sqrt(D)
    out_dtype = x.dtype

    # bf16 operands for every MXU matmul (f32 accumulation inside the kernels).
    xc = x.astype(compute_dtype)

    # c_attn weight (C, 3C) -> per-head (H, C, D) blocks for q / k / v.
    w_qkv = w_attn.reshape(C, 3, H, D).transpose(1, 2, 0, 3)     # (3, H, C, D)
    wq = w_qkv[0].astype(compute_dtype)
    wk = w_qkv[1].astype(compute_dtype)
    wv = w_qkv[2].astype(compute_dtype)
    b_qkv = b_attn.reshape(3, H, 1, D).astype(jnp.float32)       # f32 bias
    bq, bk, bv = b_qkv[0], b_qkv[1], b_qkv[2]

    # c_proj weight (C, C) -> (H, D, C): y @ Wproj == sum_h y_h @ Wproj_h.
    w_proj_h = w_proj.reshape(H, D, C).astype(compute_dtype)
    b_proj_r = b_proj.reshape(1, C).astype(jnp.float32)

    # ---- 1) QKV projection -> q, k, v of shape (B, H, T, D) --------------
    weight_spec = pl.BlockSpec((H, C, D), lambda b, t, h: (0, 0, 0))
    bias_spec = pl.BlockSpec((H, 1, D), lambda b, t, h: (0, 0, 0))
    head_out_spec = pl.BlockSpec((None, None, block_q, D),
                                 lambda b, t, h: (b, h, t, 0))
    qkv_shape = jax.ShapeDtypeStruct((B, H, T, D), compute_dtype)
    q, k, v = pl.pallas_call(
        functools.partial(_qkv_kernel, scale=scale),
        out_shape=(qkv_shape, qkv_shape, qkv_shape),
        grid=(B, n_q, H),
        in_specs=[
            pl.BlockSpec((None, block_q, C), lambda b, t, h: (b, t, 0)),
            weight_spec, weight_spec, weight_spec,
            bias_spec, bias_spec, bias_spec,
        ],
        out_specs=(head_out_spec, head_out_spec, head_out_spec),
        compiler_params=pltpu.CompilerParams(
            dimension_semantics=("parallel", "parallel", "parallel"),
            vmem_limit_bytes=VMEM_LIMIT),
    )(xc, wq, wk, wv, bq, bk, bv)

    # ---- 2) Fused flash attention + output projection ---------------------
    def kv_index(b, qi, h, ki):
        # Clamp to the last causally-needed KV block: fully-skipped steps keep
        # the same block index -> Pallas issues no new DMA for them.
        max_ki = ((qi + 1) * block_q - 1) // block_k
        return (b, h, jnp.minimum(ki, max_ki), 0)

    out = pl.pallas_call(
        functools.partial(_flash_proj_kernel,
                          block_q=block_q, block_k=block_k),
        out_shape=jax.ShapeDtypeStruct((B, T, C), out_dtype),
        grid=(B, n_q, H, n_k),
        in_specs=[
            pl.BlockSpec((None, None, block_q, D),
                         lambda b, qi, h, ki: (b, h, qi, 0)),
            pl.BlockSpec((None, None, block_k, D), kv_index),
            pl.BlockSpec((None, None, block_k, D), kv_index),
            pl.BlockSpec((H, D, C), lambda b, qi, h, ki: (0, 0, 0)),
            pl.BlockSpec((1, C), lambda b, qi, h, ki: (0, 0)),
        ],
        out_specs=pl.BlockSpec((None, block_q, C),
                               lambda b, qi, h, ki: (b, qi, 0)),
        scratch_shapes=[
            pltpu.VMEM((block_q, 1), jnp.float32),   # running max m
            pltpu.VMEM((block_q, 1), jnp.float32),   # running sum l
            pltpu.VMEM((block_q, D), jnp.float32),   # per-head attention acc
            pltpu.VMEM((block_q, C), jnp.float32),   # fused out-proj acc
        ],
        compiler_params=pltpu.CompilerParams(
            dimension_semantics=("parallel", "parallel", "arbitrary",
                                 "arbitrary"),
            vmem_limit_bytes=VMEM_LIMIT),
    )(q, k, v, w_proj_h, b_proj_r)

    return out


# ---------------------------------------------------------------------------
# Pure-JAX f32 reference mirroring the PyTorch forward
# ---------------------------------------------------------------------------
def _reference(x, w_attn, b_attn, w_proj, b_proj, n_head):
    B, T, C = x.shape
    D = C // n_head
    qkv = x @ w_attn + b_attn                                   # (B, T, 3C)
    q, k, v = jnp.split(qkv, 3, axis=2)
    q = q.reshape(B, T, n_head, D).transpose(0, 2, 1, 3)
    k = k.reshape(B, T, n_head, D).transpose(0, 2, 1, 3)
    v = v.reshape(B, T, n_head, D).transpose(0, 2, 1, 3)
    att = (q @ k.transpose(0, 1, 3, 2)) * (1.0 / math.sqrt(D))
    mask = jnp.tril(jnp.ones((T, T), dtype=bool))
    att = jnp.where(mask[None, None], att, -jnp.inf)
    att = jax.nn.softmax(att, axis=-1)
    y = att @ v
    y = y.transpose(0, 2, 1, 3).reshape(B, T, C)
    return y @ w_proj + b_proj


def _run_case(key, B, T, n_embd, n_head, block_q, block_k, tol):
    kx, k1, k2, k3, k4 = jax.random.split(key, 5)
    x = jax.random.normal(kx, (B, T, n_embd), dtype=jnp.float32)
    bound = 1.0 / math.sqrt(n_embd)
    w_attn = jax.random.uniform(k1, (n_embd, 3 * n_embd), jnp.float32,
                                -bound, bound)
    b_attn = jax.random.uniform(k2, (3 * n_embd,), jnp.float32, -bound, bound)
    w_proj = jax.random.uniform(k3, (n_embd, n_embd), jnp.float32,
                                -bound, bound)
    b_proj = jax.random.uniform(k4, (n_embd,), jnp.float32, -bound, bound)

    out = causal_self_attention(x, w_attn, b_attn, w_proj, b_proj, n_head,
                                block_q=block_q, block_k=block_k)
    out = jax.block_until_ready(out)
    ref = _reference(x, w_attn, b_attn, w_proj, b_proj, n_head)

    assert out.shape == (B, T, n_embd)
    assert jnp.all(jnp.isfinite(out)), "non-finite output"
    # bf16 MXU operands + approx reciprocal vs f32 reference -> bf16 tolerance
    assert jnp.allclose(out, ref, atol=tol, rtol=tol), (
        f"mismatch vs reference (max abs err {jnp.max(jnp.abs(out - ref))})")


if __name__ == "__main__":
    key = jax.random.PRNGKey(0)
    k_small, k_big = jax.random.split(key)

    # Small smoke test (shapes consistent with the module: n_embd % n_head == 0).
    _run_case(k_small, B=2, T=8, n_embd=32, n_head=4,
              block_q=256, block_k=512, tol=3e-2)

    # Realistic-tile validation: multiple query and KV blocks -> exercises the
    # online-softmax carry, causal block/DMA skipping, straddle vs interior
    # mask branches, and the fused per-head out-projection accumulation.
    _run_case(k_big, B=2, T=1024, n_embd=128, n_head=4,
              block_q=256, block_k=512, tol=3e-2)

    print("KERNEL_OK")
</pallas_src>

<mosaic_0001>
module attributes {stable_mosaic.version = 11 : i64} {
  func.func @_qkv_kernel(%arg0: i32, %arg1: i32, %arg2: i32, %arg3: memref<1x8x32xbf16, #tpu.memory_space<vmem>>, %arg4: memref<4x32x8xbf16, #tpu.memory_space<vmem>>, %arg5: memref<4x32x8xbf16, #tpu.memory_space<vmem>>, %arg6: memref<4x32x8xbf16, #tpu.memory_space<vmem>>, %arg7: memref<4x1x8xf32, #tpu.memory_space<vmem>>, %arg8: memref<4x1x8xf32, #tpu.memory_space<vmem>>, %arg9: memref<4x1x8xf32, #tpu.memory_space<vmem>>, %arg10: memref<1x1x8x8xbf16, #tpu.memory_space<vmem>>, %arg11: memref<1x1x8x8xbf16, #tpu.memory_space<vmem>>, %arg12: memref<1x1x8x8xbf16, #tpu.memory_space<vmem>>) attributes {dimension_semantics = [#tpu.dimension_semantics<parallel>, #tpu.dimension_semantics<parallel>, #tpu.dimension_semantics<parallel>], iteration_bounds = array<i64: 2, 1, 4>, scalar_prefetch = 0 : i64, scratch_operands = 0 : i64, tpu.core_type = #tpu.core_type<tc>, window_params = [{transform_indices = @transform_0, window_bounds = array<i64: 1, 8, 32>}, {pipeline_mode = #tpu.pipeline_mode<synchronous>, transform_indices = @transform_1, window_bounds = array<i64: 4, 32, 8>}, {pipeline_mode = #tpu.pipeline_mode<synchronous>, transform_indices = @transform_2, window_bounds = array<i64: 4, 32, 8>}, {pipeline_mode = #tpu.pipeline_mode<synchronous>, transform_indices = @transform_3, window_bounds = array<i64: 4, 32, 8>}, {pipeline_mode = #tpu.pipeline_mode<synchronous>, transform_indices = @transform_4, window_bounds = array<i64: 4, 1, 8>}, {pipeline_mode = #tpu.pipeline_mode<synchronous>, transform_indices = @transform_5, window_bounds = array<i64: 4, 1, 8>}, {pipeline_mode = #tpu.pipeline_mode<synchronous>, transform_indices = @transform_6, window_bounds = array<i64: 4, 1, 8>}, {transform_indices = @transform_7, window_bounds = array<i64: 1, 1, 8, 8>}, {transform_indices = @transform_8, window_bounds = array<i64: 1, 1, 8, 8>}, {transform_indices = @transform_9, window_bounds = array<i64: 1, 1, 8, 8>}]} {
    %c0 = arith.constant 0 : index
    %c0_0 = arith.constant 0 : index
    %c0_1 = arith.constant 0 : index
    %0 = vector.load %arg3[%c0, %c0_0, %c0_1] : memref<1x8x32xbf16, #tpu.memory_space<vmem>>, vector<1x8x32xbf16>
    %1 = vector.shape_cast %0 : vector<1x8x32xbf16> to vector<8x32xbf16>
    %2 = arith.index_cast %arg2 : i32 to index
    %c0_2 = arith.constant 0 : index
    %c0_3 = arith.constant 0 : index
    %3 = vector.load %arg4[%2, %c0_2, %c0_3] : memref<4x32x8xbf16, #tpu.memory_space<vmem>>, vector<1x32x8xbf16>
    %4 = vector.shape_cast %3 : vector<1x32x8xbf16> to vector<32x8xbf16>
    %cst = arith.constant dense<0.000000e+00> : vector<8x8xf32>
    %5 = tpu.matmul %1, %4, %cst {dimension_numbers = #tpu.dot_dimension_numbers<[1], [0], [0], [1], [0, 0, 1, 1], [], []>} : vector<8x32xbf16>, vector<32x8xbf16>, vector<8x8xf32> -> vector<8x8xf32>
    %6 = arith.index_cast %arg2 : i32 to index
    %c0_4 = arith.constant 0 : index
    %c0_5 = arith.constant 0 : index
    %7 = vector.load %arg7[%6, %c0_4, %c0_5] : memref<4x1x8xf32, #tpu.memory_space<vmem>>, vector<1x1x8xf32>
    %8 = vector.shape_cast %7 : vector<1x1x8xf32> to vector<1x8xf32>
    %9 = vector.broadcast %8 : vector<1x8xf32> to vector<8x8xf32>
    %10 = arith.addf %5, %9 : vector<8x8xf32>
    %cst_6 = arith.constant 0.353553385 : f32
    %11 = vector.broadcast %cst_6 : f32 to vector<8x8xf32>
    %12 = arith.mulf %10, %11 : vector<8x8xf32>
    %13 = arith.truncf %12 : vector<8x8xf32> to vector<8x8xbf16>
    %c0_7 = arith.constant 0 : index
    %c0_8 = arith.constant 0 : index
    %c0_9 = arith.constant 0 : index
    %c0_10 = arith.constant 0 : index
    %14 = vector.load %arg10[%c0_7, %c0_8, %c0_9, %c0_10] : memref<1x1x8x8xbf16, #tpu.memory_space<vmem>>, vector<1x1x8x8xbf16>
    %15 = vector.shape_cast %14 : vector<1x1x8x8xbf16> to vector<8x8xbf16>
    %16 = vector.shape_cast %13 : vector<8x8xbf16> to vector<1x1x8x8xbf16>
    tpu.vector_store %arg10[%c0_7, %c0_8, %c0_9, %c0_10], %16 {strides = array<i32>} : memref<1x1x8x8xbf16, #tpu.memory_space<vmem>>, vector<1x1x8x8xbf16>,
    %17 = arith.index_cast %arg2 : i32 to index
    %c0_11 = arith.constant 0 : index
    %c0_12 = arith.constant 0 : index
    %18 = vector.load %arg5[%17, %c0_11, %c0_12] : memref<4x32x8xbf16, #tpu.memory_space<vmem>>, vector<1x32x8xbf16>
    %19 = vector.shape_cast %18 : vector<1x32x8xbf16> to vector<32x8xbf16>
    %cst_13 = arith.constant dense<0.000000e+00> : vector<8x8xf32>
    %20 = tpu.matmul %1, %19, %cst_13 {dimension_numbers = #tpu.dot_dimension_numbers<[1], [0], [0], [1], [0, 0, 1, 1], [], []>} : vector<8x32xbf16>, vector<32x8xbf16>, vector<8x8xf32> -> vector<8x8xf32>
    %21 = arith.index_cast %arg2 : i32 to index
    %c0_14 = arith.constant 0 : index
    %c0_15 = arith.constant 0 : index
    %22 = vector.load %arg8[%21, %c0_14, %c0_15] : memref<4x1x8xf32, #tpu.memory_space<vmem>>, vector<1x1x8xf32>
    %23 = vector.shape_cast %22 : vector<1x1x8xf32> to vector<1x8xf32>
    %24 = vector.broadcast %23 : vector<1x8xf32> to vector<8x8xf32>
    %25 = arith.addf %20, %24 : vector<8x8xf32>
    %26 = arith.truncf %25 : vector<8x8xf32> to vector<8x8xbf16>
    %c0_16 = arith.constant 0 : index
    %c0_17 = arith.constant 0 : index
    %c0_18 = arith.constant 0 : index
    %c0_19 = arith.constant 0 : index
    %27 = vector.load %arg11[%c0_16, %c0_17, %c0_18, %c0_19] : memref<1x1x8x8xbf16, #tpu.memory_space<vmem>>, vector<1x1x8x8xbf16>
    %28 = vector.shape_cast %27 : vector<1x1x8x8xbf16> to vector<8x8xbf16>
    %29 = vector.shape_cast %26 : vector<8x8xbf16> to vector<1x1x8x8xbf16>
    tpu.vector_store %arg11[%c0_16, %c0_17, %c0_18, %c0_19], %29 {strides = array<i32>} : memref<1x1x8x8xbf16, #tpu.memory_space<vmem>>, vector<1x1x8x8xbf16>,
    %30 = arith.index_cast %arg2 : i32 to index
    %c0_20 = arith.constant 0 : index
    %c0_21 = arith.constant 0 : index
    %31 = vector.load %arg6[%30, %c0_20, %c0_21] : memref<4x32x8xbf16, #tpu.memory_space<vmem>>, vector<1x32x8xbf16>
    %32 = vector.shape_cast %31 : vector<1x32x8xbf16> to vector<32x8xbf16>
    %cst_22 = arith.constant dense<0.000000e+00> : vector<8x8xf32>
    %33 = tpu.matmul %1, %32, %cst_22 {dimension_numbers = #tpu.dot_dimension_numbers<[1], [0], [0], [1], [0, 0, 1, 1], [], []>} : vector<8x32xbf16>, vector<32x8xbf16>, vector<8x8xf32> -> vector<8x8xf32>
    %34 = arith.index_cast %arg2 : i32 to index
    %c0_23 = arith.constant 0 : index
    %c0_24 = arith.constant 0 : index
    %35 = vector.load %arg9[%34, %c0_23, %c0_24] : memref<4x1x8xf32, #tpu.memory_space<vmem>>, vector<1x1x8xf32>
    %36 = vector.shape_cast %35 : vector<1x1x8xf32> to vector<1x8xf32>
    %37 = vector.broadcast %36 : vector<1x8xf32> to vector<8x8xf32>
    %38 = arith.addf %33, %37 : vector<8x8xf32>
    %39 = arith.truncf %38 : vector<8x8xf32> to vector<8x8xbf16>
    %c0_25 = arith.constant 0 : index
    %c0_26 = arith.constant 0 : index
    %c0_27 = arith.constant 0 : index
    %c0_28 = arith.constant 0 : index
    %40 = vector.load %arg12[%c0_25, %c0_26, %c0_27, %c0_28] : memref<1x1x8x8xbf16, #tpu.memory_space<vmem>>, vector<1x1x8x8xbf16>
    %41 = vector.shape_cast %40 : vector<1x1x8x8xbf16> to vector<8x8xbf16>
    %42 = vector.shape_cast %39 : vector<8x8xbf16> to vector<1x1x8x8xbf16>
    tpu.vector_store %arg12[%c0_25, %c0_26, %c0_27, %c0_28], %42 {strides = array<i32>} : memref<1x1x8x8xbf16, #tpu.memory_space<vmem>>, vector<1x1x8x8xbf16>,
    return
  }
  func.func @transform_0(%arg0: i32, %arg1: i32, %arg2: i32) -> (i32, i32, i32) {
    %c0_i32 = arith.constant 0 : i32
    %c0_i32_0 = arith.constant 0 : i32
    return %arg0, %arg1, %c0_i32 : i32, i32, i32
  }
  func.func @transform_1(%arg0: i32, %arg1: i32, %arg2: i32) -> (i32, i32, i32) {
    %c0_i32 = arith.constant 0 : i32
    %c0_i32_0 = arith.constant 0 : i32
    %c0_i32_1 = arith.constant 0 : i32
    %c0_i32_2 = arith.constant 0 : i32
    return %c0_i32, %c0_i32_0, %c0_i32_1 : i32, i32, i32
  }
  func.func @transform_2(%arg0: i32, %arg1: i32, %arg2: i32) -> (i32, i32, i32) {
    %c0_i32 = arith.constant 0 : i32
    %c0_i32_0 = arith.constant 0 : i32
    %c0_i32_1 = arith.constant 0 : i32
    %c0_i32_2 = arith.constant 0 : i32
    return %c0_i32, %c0_i32_0, %c0_i32_1 : i32, i32, i32
  }
  func.func @transform_3(%arg0: i32, %arg1: i32, %arg2: i32) -> (i32, i32, i32) {
    %c0_i32 = arith.constant 0 : i32
    %c0_i32_0 = arith.constant 0 : i32
    %c0_i32_1 = arith.constant 0 : i32
    %c0_i32_2 = arith.constant 0 : i32
    return %c0_i32, %c0_i32_0, %c0_i32_1 : i32, i32, i32
  }
  func.func @transform_4(%arg0: i32, %arg1: i32, %arg2: i32) -> (i32, i32, i32) {
    %c0_i32 = arith.constant 0 : i32
    %c0_i32_0 = arith.constant 0 : i32
    %c0_i32_1 = arith.constant 0 : i32
    %c0_i32_2 = arith.constant 0 : i32
    return %c0_i32, %c0_i32_0, %c0_i32_1 : i32, i32, i32
  }
  func.func @transform_5(%arg0: i32, %arg1: i32, %arg2: i32) -> (i32, i32, i32) {
    %c0_i32 = arith.constant 0 : i32
    %c0_i32_0 = arith.constant 0 : i32
    %c0_i32_1 = arith.constant 0 : i32
    %c0_i32_2 = arith.constant 0 : i32
    return %c0_i32, %c0_i32_0, %c0_i32_1 : i32, i32, i32
  }
  func.func @transform_6(%arg0: i32, %arg1: i32, %arg2: i32) -> (i32, i32, i32) {
    %c0_i32 = arith.constant 0 : i32
    %c0_i32_0 = arith.constant 0 : i32
    %c0_i32_1 = arith.constant 0 : i32
    %c0_i32_2 = arith.constant 0 : i32
    return %c0_i32, %c0_i32_0, %c0_i32_1 : i32, i32, i32
  }
  func.func @transform_7(%arg0: i32, %arg1: i32, %arg2: i32) -> (i32, i32, i32, i32) {
    %c0_i32 = arith.constant 0 : i32
    %c0_i32_0 = arith.constant 0 : i32
    return %arg0, %arg2, %arg1, %c0_i32 : i32, i32, i32, i32
  }
  func.func @transform_8(%arg0: i32, %arg1: i32, %arg2: i32) -> (i32, i32, i32, i32) {
    %c0_i32 = arith.constant 0 : i32
    %c0_i32_0 = arith.constant 0 : i32
    return %arg0, %arg2, %arg1, %c0_i32 : i32, i32, i32, i32
  }
  func.func @transform_9(%arg0: i32, %arg1: i32, %arg2: i32) -> (i32, i32, i32, i32) {
    %c0_i32 = arith.constant 0 : i32
    %c0_i32_0 = arith.constant 0 : i32
    return %arg0, %arg2, %arg1, %c0_i32 : i32, i32, i32, i32
  }
}

</mosaic_0001>

<bundles_post_ra>
// kernel: tpu_custom_call.1
= control target key start
LH: loop header
LB: loop body
LE: loop exit
PB: predicated region body
PF: predicated region fallthrough
CT: control target
= control target key end

     0   :  { %s1305_s0 = inlined_call_operand.vmem [shape: bf16[2,8,32], index: 0, kind: input, shape index: {}]   ;;  %s1306_s1 = inlined_call_operand.vmem [shape: bf16[4,32,8], index: 1, kind: input, shape index: {}]   ;;  %s1307_s2 = inlined_call_operand.vmem [shape: bf16[4,32,8], index: 2, kind: input, shape index: {}]   ;;  %s1308_s3 = inlined_call_operand.vmem [shape: bf16[4,32,8], index: 3, kind: input, shape index: {}]   ;;  %s1309_s4 = inlined_call_operand.vmem [shape: f32[4,1,8], index: 4, kind: input, shape index: {}]   ;;  %s1310_s5 = inlined_call_operand.vmem [shape: f32[4,1,8], index: 5, kind: input, shape index: {}]   ;;  %s1311_s6 = inlined_call_operand.vmem [shape: f32[4,1,8], index: 6, kind: input, shape index: {}]   ;;  %s1312_s7 = inlined_call_operand.hbm [shape: bf16[2,4,8,8], index: 7, kind: output, shape index: {0}]   ;;  %s1313_s8 = inlined_call_operand.hbm [shape: bf16[2,4,8,8], index: 8, kind: output, shape index: {1}]   ;;  %s1314_s9 = inlined_call_operand.hbm [shape: bf16[2,4,8,8], index: 9, kind: output, shape index: {2}]  }
   0x1   :  { %1323 = sst [smem:[#allocation15_spill]] %s1305_s0 }
   0x2   :  { %1324 = sst [smem:[#allocation16_spill]] %s1306_s1 }
   0x3   :  { %1325 = sst [smem:[#allocation17_spill]] %s1307_s2 }
   0x4   :  { %15 = vsyncpa [#allocation3], 0 }
   0x5   :  { %17 = vsyncpa [#allocation3 + $0x1], 0 }
   0x6   :  { %18 = vsyncpa [#allocation5], 0 }
   0x7   :  { %20 = vsyncpa [#allocation5 + $0x1], 0  ;;  %s1081_s30 = smov 0   ;;  %s1083_s10 = smov 0  }
   0x8   :  { %s1085_s11 = smov 0   ;;  %s1087_s12 = smov 0  }
   0x9   :  { %s1089_s13 = smov 0   ;;  %s1091_s14 = smov 0  }
   0xa   :  { %s1093_s15 = smov 0   ;;  %s1095_s16 = smov 0  }
   0xb LB: > { %1326 = sst [smem:[#allocation9_spill]] %s1009_s11  ;;  %s1316_s17 = sadd.s32 4294967295, %s1029_s16   ;;  %s1029_s16 = sphi %s1095_s16, %s26_s16   ;;  %s1025_s15 = sphi %s1093_s15, %s1345_s15   ;;  %s1021_s14 = sphi %s1091_s14, %s1344_s14   ;;  %s1017_s13 = sphi %s1089_s13, %s1343_s13   ;;  %s1013_s12 = sphi %s1087_s12, %s1342_s12   ;;  %s1009_s11 = sphi %s1085_s11, %s1341_s11   ;;  %s1005_s10 = sphi %s1083_s10, %s1347_s10   ;;  %s1001_s30 = sphi %s1081_s30, %s1346_s30  }
   0xc   : > { %1327 = sst [smem:[#allocation10_spill]] %s1021_s14  ;;  %s1315_s18 = sadd.s32 4294967294, %s1029_s16  }
   0xd   : > { %1328 = sst [smem:[#allocation11_spill]] %s1025_s15  ;;  %s38_s19 = sadd.s32 1, %s1021_s14 }
   0xe   : > { %p39_p0 = scmp.ge.s32.totalorder %s38_s19, 4  ;;  %s45_s20 = sadd.s32 1, %s1025_s15 }
   0xf   : > { %p220_p1 = scmp.ne.s32.totalorder %s1009_s11, %s1005_s10  ;;  %p221_p2 = scmp.eq.s32.totalorder %s1316_s17, 7 }
  0x10   : > { %s1349_s19 = smov (%p39_p0, %s38_s19), 0  ;;  %s1351_s20 = smov (!%p39_p0, %s45_s20), %s1025_s15 }
  0x11   : > { %1329 = sst [smem:[#allocation12_spill]] %s1349_s19  ;;  %s204_s21 = ssub.s32 %s1021_s14, %s1349_s19 }
  0x12   : > { %p1134_p3 = por %p221_p2, %p220_p1  ;;  %p47_p4 = scmp.ge.s32.totalorder %s1351_s20, 2 }
  0x13   : > { %p226_p5 = scmp.ne.s32.totalorder %s1005_s10, %s1001_s30  ;;  %p227_p6 = scmp.eq.s32.totalorder %s1315_s18, 7 }
  0x14   : > { %p735_p7 = scmp.ge.s32.totalorder %s1029_s16, 1  ;;  %s1353_s20 = smov (%p47_p4, %s1351_s20), 0 }
  0x15   : > { %1331 = sst [smem:[#allocation13_spill]] %s1353_s20  ;;  %p1145_p8 = por %p227_p6, %p226_p5 }
  0x16   : > { %p333_p9 = scmp.lt.s32.totalorder %s1029_s16, 9  ;;  %s203_s24 = ssub.s32 %s1025_s15, %s1353_s20 }
  0x17   : > { %s210_s25 = sadd.s32 1, %s1009_s11  ;;  %s205_s26 = sor.u32 %s204_s21, %s203_s24 }
  0x18   : > { %p334_p10 = pnand %p735_p7, %p333_p9  ;;  %p208_p11 = scmp.eq.s32.totalorder %s205_s26, 0 }
  0x19   : > { %s782_s28 = sshll.u32 (!%p334_p10), %s1013_s12, 4  ;;  %p381_p12 = scmp.lt.s32.totalorder (!%p334_p10), %s1017_s13, 1 }
  0x1a   : > { %s1154_s27 = scalar_select %p208_p11, %s1009_s11, %s210_s25  }
  0x1b   : > { %337 = sbr.rel (%p334_p10) target bundleno = 203 (0xcb), region = 48  ;;  %s1334_s1 = sld [smem:[#allocation16_spill]] (!%p334_p10) }
  0x1c   : > { %1333 = sst [smem:[#allocation14_spill]] %s1154_s27  ;;  %s474_s25 = scalar_lea.vmem (!%p334_p10), %s1308_s3, %s782_s28 }
  0x1d   : > { %s1335_s2 = sld [smem:[#allocation17_spill]] (!%p334_p10)  ;;  %s397_s27 = scalar_lea.vmem (!%p334_p10), %s1309_s4, %s1013_s12 }
  0x1e   : > { %s1336_s0 = sld [smem:[#allocation15_spill]] (!%p334_p10)  ;;  %s774_s24 = sshll.u32 (!%p334_p10), %s1017_s13, 2 }
  0x1f   : > { %s533_s26 = sadd.s32 (!%p334_p10), %s1013_s12, %s774_s24 }
  0x20   : > { %v790_v2 = vld [vmem:[%s474_s25 + $0x8] sm:$0xff]  ;;  %s382_s11 = scalar_select %p381_p12, %s1017_s13, 1  ;;  %v789_v5 = vld [vmem:[%s474_s25] sm:$0xff]  ;;  %vm414_vm0 = vcmask 261120   ;;  %vm433_vm1 = vcmask 60416  }
  0x21   : > { %s392_s17 = scalar_lea.vmem %s1334_s1, %s782_s28  ;;  %502 = vmatpush.bf16.msra.mxu2 %v790_v2  ;;  %s1322_s25 = sand.u32 1, %s1005_s10   ;;  %v872_v7 = vld [vmem:[%s397_s27] ss:$0 sm:$0xff] }
  0x22   : > { %v784_v0 = vld [vmem:[%s392_s17 + $0x8] sm:$0xff]  ;;  %v783_v3 = vld [vmem:[%s392_s17] sm:$0xff]  ;;  %s739_s14 = sshll.u32 %s382_s11, 2  ;;  %s479_s11 = scalar_lea.vmem %s1311_s6, %s1013_s12 }
  0x23   : > { %s436_s20 = scalar_lea.vmem %s1335_s2, %s782_s28  ;;  %424 = vmatpush.bf16.msra.mxu0 %v784_v0  ;;  %s441_s28 = scalar_lea.vmem %s1310_s5, %s1013_s12  ;;  %v874_v15 = vld [vmem:[%s479_s11] ss:$0 sm:$0xff] }
  0x24   : > { %v787_v1 = vld [vmem:[%s436_s20 + $0x8] sm:$0xff]  ;;  %v786_v4 = vld [vmem:[%s436_s20] sm:$0xff]  ;;  %s387_s15 = scalar_lea.vmem %s1336_s0, %s739_s14  ;;  %s1188_s14 = sshll.u32 %s1322_s25, 2 }
  0x25   : > { %464 = vmatpush.bf16.msra.mxu1 %v787_v1  ;;  %v389_v6 = vld [vmem:[%s387_s15] sm:$0xf]  ;;  %503 = vmatpush.bf16.msra.mxu2 %v789_v5  ;;  %s1190_s18 = sshll.u32 %s533_s26, 2  ;;  %s1337_s20 = sadd.s32 4294967295, %s1029_s16  }
  0x26   : > { %v873_v8 = vld [vmem:[%s441_s28] ss:$0 sm:$0xff]  ;;  %s552_s17 = scalar_lea.hbm %s1313_s8, %s1190_s18  ;;  %s1198_s29 = sand.u32 1, %s1337_s20  }
  0x27   : > { %425 = vmatpush.bf16.msra.mxu0 %v783_v3  ;;  %s535_s21 = scalar_lea.hbm %s1312_s7, %s1190_s18  ;;  %s373_s24 = scalar_lea.vmem [#allocation4], %s1188_s14 }
  0x28   : > { %770 = vmatmul.msk.bf16.vlgmr.msra.gmra.mxu2 %vm414_vm0, %v389_v6  ;;  %s1205_s26 = sshll.u32 %s373_s24, 4  ;;  %s1207_s27 = sshll.u32 %s552_s17, 4  ;;  %s555_s26 = int_to_ptr.vmem [resolvable:$true] %s1205_s26  ;;  %s557_s27 = int_to_ptr.hbm [resolvable:$true] %s1207_s27 }
  0x29   : > { %465 = vmatpush.bf16.msra.mxu1 %v786_v4  ;;  %s366_s28 = scalar_lea.vmem [#allocation2], %s1188_s14  ;;  %s1212_s15 = sshll.u32 %s535_s21, 4  ;;  %s540_s15 = int_to_ptr.hbm [resolvable:$true] %s1212_s15 }
  0x2a   : > { %750 = vmatmul.msk.bf16.vlgmr.msra.gmra.mxu0 %vm414_vm0, %v389_v6  ;;  %s1210_s19 = sshll.u32 %s366_s28, 4  ;;  %s569_s13 = scalar_lea.hbm %s1314_s9, %s1190_s18  ;;  %s538_s19 = int_to_ptr.vmem [resolvable:$true] %s1210_s19 }
  0x2b   : > { %s517_s12 = scalar_lea.sflag [#allocation5], %s1198_s29  ;;  %s889_s25 = sshra.s32 %s557_s27, 4  ;;  %s890_s25 = int_to_ptr.hbm [resolvable:$true] %s889_s25 }
  0x2c   : > { %760 = vmatmul.msk.bf16.vlgmr.msra.gmra.mxu1 %vm414_vm0, %v389_v6  ;;  %s891_s21 = scalar_lea.hbm %s890_s25, 4  ;;  %s895_s11 = scalar_lea.hbm %s1313_s8, 32 }
  0x2d   : > { %p892_p13 = scmp.ne.s32.totalorder %s890_s25, %s891_s21  ;;  %p896_p2 = scmp.lt.s32.totalorder %s890_s25, %s1313_s8 }
  0x2e   : > { %p897_p4 = scmp.lt.s32.totalorder %s895_s11, %s891_s21 }
  0x2f   : > { %p893_p0 = pnand %p892_p13, %p1134_p3 }
  0x30   : > { %p898_p5 = por %p897_p4, %p896_p2 }
  0x31   : > { %p894_p1 = pneg %p893_p0 }
  0x33   : > { %p899_p6 = pnand %p898_p5, %p894_p1 }
  0xa7   : > { %v427_v9 = vpop.f32.mrf.mxu0 }
  0xa8   : > { %v428_v11 = vadd.f32 %v872_v7, %v427_v9 }
  0xa9   : > { %v467_v10 = vpop.f32.mrf.mxu1 }
  0xaa   : > { %v468_v12 = vadd.f32 %v873_v8, %v467_v10  ;;  %v431_v13 = vmul.f32 0.35355338, %v428_v11 }
  0xac   : > { %v471_v14 = vpack.c.bf16 %v468_v12, %v468_v12  ;;  %v432_v16 = vpack.c.bf16 %v431_v13, %v431_v13 }
  0xae   : > { %472 = vst.msk [vmem:[%s373_s24] sm:$0xf] %vm433_vm1, %v471_v14 }
  0xaf   : > { %902 = shalt.err (!%p899_p6)
}
  0xb0   : > { %792 = dma.vmem_to_hbm [thread:$0]  (%p1134_p3), %s555_s26, 64, %s557_s27, %s517_s12   ;;  %v505_v17 = vpop.f32.mrf.mxu2  ;;  %434 = vst.msk [vmem:[%s366_s28] sm:$0xf] %vm433_vm1, %v432_v16  ;;  %v429_v19 = vpop.f32.mrf.mxu0 }
  0xb1   : > { %s380_s0 = scalar_lea.vmem [#allocation6], %s1188_s14  ;;  %s1240_s2 = sshll.u32 %s569_s13, 4  ;;  %v506_v18 = vadd.f32 %v874_v15, %v505_v17  ;;  %v469_v20 = vpop.f32.mrf.mxu1  ;;  %s574_s2 = int_to_ptr.hbm [resolvable:$true] %s1240_s2 }
  0xb2   : > { %s1238_s1 = sshll.u32 %s380_s0, 4  ;;  %s1338_s25 = sand.u32 1, %s1005_s10   ;;  %s572_s1 = int_to_ptr.vmem [resolvable:$true] %s1238_s1 }
  0xb3   : > { %s512_s18 = scalar_lea.sflag [#allocation3], %s1338_s25  ;;  %s917_s24 = sshra.s32 %s540_s15, 4  ;;  %s918_s24 = int_to_ptr.hbm [resolvable:$true] %s917_s24 }
  0xb4   : > { %s919_s20 = scalar_lea.hbm %s918_s24, 4  ;;  %s923_s14 = scalar_lea.hbm %s1312_s7, 32 }
  0xb5   : > { %p920_p7 = scmp.ne.s32.totalorder %s918_s24, %s919_s20  ;;  %p924_p11 = scmp.lt.s32.totalorder %s918_s24, %s1312_s7 }
  0xb6   : > { %p925_p12 = scmp.lt.s32.totalorder %s923_s14, %s919_s20 }
  0xb7   : > { %p921_p9 = pnand %p920_p7, %p1134_p3 }
  0xb8   : > { %p926_p13 = por %p925_p12, %p924_p11 }
  0xb9   : > { %p922_p10 = pneg %p921_p9 }
  0xbb   : > { %p927_p0 = pnand %p926_p13, %p922_p10 }
  0xbd   : > { %930 = shalt.err (!%p927_p0)
}
  0xbe   : > { %791 = dma.vmem_to_hbm [thread:$0]  (%p1134_p3), %s538_s19, 64, %s540_s15, %s512_s18   ;;  %v509_v21 = vpack.c.bf16 %v506_v18, %v506_v18 }
  0xbf   : > { %s945_s21 = sshra.s32 %s574_s2, 4  ;;  %s951_s24 = scalar_lea.hbm %s1314_s9, 32  ;;  %s946_s21 = int_to_ptr.hbm [resolvable:$true] %s945_s21 }
  0xc0   : > { %510 = vst.msk [vmem:[%s380_s0] sm:$0xf] %vm433_vm1, %v509_v21  ;;  %s947_s11 = scalar_lea.hbm %s946_s21, 4  ;;  %p952_p5 = scmp.lt.s32.totalorder %s946_s21, %s1314_s9 }
  0xc1   : > { %p948_p1 = scmp.ne.s32.totalorder %s946_s21, %s947_s11  ;;  %p953_p6 = scmp.lt.s32.totalorder %s951_s24, %s947_s11 }
  0xc3   : > { %p949_p2 = pnand %p948_p1, %p1134_p3  ;;  %p954_p7 = por %p953_p6, %p952_p5 }
  0xc5   : > { %p950_p4 = pneg %p949_p2 }
  0xc7   : > { %p955_p9 = pnand %p954_p7, %p950_p4 }
  0xc9   : > { %958 = shalt.err (!%p955_p9)
}
  0xca   : > { %793 = dma.vmem_to_hbm [thread:$0]  (%p1134_p3), %s572_s1, 64, %s574_s2, %s517_s12   ;;  %v507_v22 = vpop.f32.mrf.mxu2 }
  0xcb PF: > { %p807_p10 = scmp.ge.s32.totalorder %s1029_s16, 2  ;;  %s585_s19 = sand.u32 1, %s1001_s30  }
  0xcc   : > { %s586_s15 = scalar_lea.sflag [#allocation3], %s585_s19 }
  0xcd   : > { %p798_p11 = pnand %p807_p10, %p1145_p8 }
  0xcf   : > { %p799_p12 = pneg %p798_p11 }
  0xd1   : > { %992 = dma.done.wait (%p799_p12), %s586_s15, 64  }
  0xd2   : > { %994 = vsyncadd (%p799_p12), %s586_s15, 4294967232  ;;  %s1339_s0 = sadd.s32 4294967294, %s1029_s16  }
  0xd3   : > { %s595_s18 = sand.u32 1, %s1339_s0  }
  0xd4   : > { %s596_s22 = scalar_lea.sflag [#allocation5], %s595_s18 }
  0xd5   : > { %996 = dma.done.wait (%p799_p12), %s596_s22, 128  }
  0xd6   : > { %998 = vsyncadd (%p799_p12), %s596_s22, 4294967168  ;;  %s26_s16 = sadd.s32 1, %s1029_s16   ;;  %s1340_s29 = sld [smem:[#allocation9_spill]] }
  0xd7   : > { %p23_p3 = scmp.ge.s32.totalorder %s26_s16, 10   ;;  %s1341_s11 = sld [smem:[#allocation14_spill]] }
  0xd8   : > { %s1342_s12 = sld [smem:[#allocation10_spill]]  ;;  %s1346_s30 = smov %s1005_s10 }
  0xd9   : > { %s1343_s13 = sld [smem:[#allocation11_spill]]  ;;  %25 = sbr.rel (!%p23_p3) target bundleno = 11 (0xb), region = 121 }
  0xda   : > { %s1344_s14 = sld [smem:[#allocation12_spill]] }
  0xdb   : > { %s1345_s15 = sld [smem:[#allocation13_spill]] }
  0xdc   : > { %s1347_s10 = smov %s1340_s29 }
  0xde   :  { %612 = vsyncpa [#allocation3], 1 }
  0xdf   :  { %614 = vsyncpa [#allocation3 + $0x1], 1 }
  0xe0   :  { %615 = vsyncpa [#allocation5], 1 }
  0xe1   :  { %617 = vsyncpa [#allocation5 + $0x1], 1 }

</bundles_post_ra>
